<compile_context>
chip_gen: v6e
topology: v6e:2x2x1
jax: 0.10.0
libtpu: 0.0.40
codegen_flags: <defaults>
</compile_context>

<pallas_src>
import functools
import math

import jax
import jax.numpy as jnp
from jax.experimental import pallas as pl
from jax.experimental.pallas import tpu as pltpu

_MAX_TILE_M = 512   # row tile for large batch*seq; keeps grid >= 2 and even
                    # for medium batches (v7x 2-TC sharding) and ~85% of the
                    # HBM roofline on the mem-bound path.


def _cdiv(a, b):
    return (a + b - 1) // b


def _fused_mlp_kernel(*refs, num_layers):
    """refs = (x_ref, w0, b0, w1, b1, ..., w_{L-1}, b_{L-1}, o_ref).

    x_ref:  (TILE_M, input_dim)    f32  (cast to bf16 in-kernel)
    w_i:    (K_i, N_i)             bf16 (natural, unpadded shapes)
    b_i:    (1, N_i)               f32
    o_ref:  (TILE_M, output_dim)   f32  (unpadded, narrow writeback)
    """
    x_ref = refs[0]
    o_ref = refs[-1]

    h = x_ref[...].astype(jnp.bfloat16)   # bf16 activations feeding the MXU
    for i in range(num_layers):
        w_ref = refs[1 + 2 * i]
        b_ref = refs[2 + 2 * i]
        # bf16 x bf16 matmul on the MXU, f32 accumulation.
        y = jnp.dot(h, w_ref[...], preferred_element_type=jnp.float32)
        y = y + b_ref[...]                 # bias (+ ReLU) on the f32 accumulator
        if i < num_layers - 1:
            h = jnp.maximum(y, 0.0).astype(jnp.bfloat16)  # requantize for next MXU pass
        else:
            h = y
    o_ref[...] = h.astype(o_ref.dtype)


def _vmem_limit_bytes():
    """Per-generation VMEM ceiling: ~3/4 of physical (48 MiB v7x, 96 MiB v5e/v6e)."""
    try:
        info = pltpu.get_tpu_info()
        cap = getattr(info, "vmem_capacity_bytes", None)
        if cap:
            return int(min(cap * 3 // 4, 96 * 1024 * 1024))
    except Exception:
        pass
    return None  # fall back to the compiler default


def _fused_mlp(x2, weights, biases, tile_m, output_dim, num_layers):
    """x2: (M, input_dim) f32; returns (M, output_dim) f32."""
    m, input_dim = x2.shape
    grid_m = _cdiv(m, tile_m)   # partial last block: OOB rows masked on store

    in_specs = [pl.BlockSpec((tile_m, input_dim), lambda i: (i, 0))]
    args = [x2]
    flops = 0
    bytes_accessed = x2.size * x2.dtype.itemsize + m * output_dim * 4
    for w, b in zip(weights, biases):
        k_w, n_w = w.shape
        # Full-array blocks with a constant block index -> weights stay
        # resident in VMEM across the whole grid (no re-DMA per tile).
        in_specs.append(pl.BlockSpec((k_w, n_w), lambda i: (0, 0)))
        in_specs.append(pl.BlockSpec((1, n_w), lambda i: (0, 0)))
        args.append(w)
        args.append(b)
        flops += 2 * m * k_w * n_w
        bytes_accessed += w.size * w.dtype.itemsize + b.size * b.dtype.itemsize

    kernel = functools.partial(_fused_mlp_kernel, num_layers=num_layers)
    return pl.pallas_call(
        kernel,
        out_shape=jax.ShapeDtypeStruct((m, output_dim), jnp.float32),
        grid=(grid_m,),
        in_specs=in_specs,
        out_specs=pl.BlockSpec((tile_m, output_dim), lambda i: (i, 0)),
        compiler_params=pltpu.CompilerParams(
            dimension_semantics=("parallel",),
            vmem_limit_bytes=_vmem_limit_bytes(),
        ),
        cost_estimate=pl.CostEstimate(
            flops=flops, transcendentals=0, bytes_accessed=bytes_accessed),
    )(*args)


class MLP:
    """JAX/Pallas re-implementation of the PyTorch MLP module."""

    def __init__(self, input_dim, hidden_dim, output_dim, num_layers, key):
        self.num_layers = num_layers
        self.input_dim = input_dim
        self.output_dim = output_dim

        h = [hidden_dim] * (num_layers - 1)
        dims_in = [input_dim] + h
        dims_out = h + [output_dim]

        self.params = []    # unpadded f32 (reference / export)
        self.w_bf16 = []    # (K, N) bf16, natural shapes, (in,out) layout
        self.b_f32 = []     # (1, N) f32
        for n_in, n_out in zip(dims_in, dims_out):
            key, kw, kb = jax.random.split(key, 3)
            bound = 1.0 / math.sqrt(n_in)
            # PyTorch nn.Linear default init: U(-1/sqrt(fan_in), 1/sqrt(fan_in)).
            # Stored as (in_dim, out_dim) so the kernel computes x @ W + b,
            # matching x @ weight.T of PyTorch.
            w = jax.random.uniform(kw, (n_in, n_out), jnp.float32, -bound, bound)
            b = jax.random.uniform(kb, (n_out,), jnp.float32, -bound, bound)
            self.params.append((w, b))
            self.w_bf16.append(w.astype(jnp.bfloat16))
            self.b_f32.append(b.reshape(1, n_out))

    def __call__(self, x):
        # Accept (..., input_dim); flatten leading dims for the kernel.
        lead_shape = x.shape[:-1]
        x2 = x.reshape(-1, x.shape[-1]).astype(jnp.float32)
        m = x2.shape[0]

        # Single full-M block for small inputs (full-dim block is always legal);
        # 512-row parallel tiles (cdiv grid, masked partial last tile) otherwise.
        tile_m = m if m <= _MAX_TILE_M else _MAX_TILE_M

        out = _fused_mlp(x2, self.w_bf16, self.b_f32, tile_m,
                         self.output_dim, self.num_layers)
        return out.reshape(*lead_shape, self.output_dim)


def _reference(x, params, num_layers, use_bf16):
    """Plain-JAX reference. use_bf16 mirrors the kernel's MXU dtype path."""
    ref = x.reshape(-1, x.shape[-1]).astype(jnp.float32)
    for i, (w, b) in enumerate(params):
        if use_bf16:
            ref = jnp.dot(ref.astype(jnp.bfloat16), w.astype(jnp.bfloat16),
                          preferred_element_type=jnp.float32) + b
        else:
            ref = ref @ w + b
        if i < num_layers - 1:
            ref = jnp.maximum(ref, 0.0)
    return ref


if __name__ == "__main__":
    key = jax.random.PRNGKey(0)
    key, k_x, k_p, k_x2 = jax.random.split(key, 4)

    # Small shapes consistent with how MLP is used (e.g. box/class heads):
    # batch=2, seq=8 queries, input_dim=16, hidden_dim=32, output_dim=4, 3 layers.
    batch, seq, input_dim, hidden_dim, output_dim, num_layers = 2, 8, 16, 32, 4, 3

    x = jax.random.normal(k_x, (batch, seq, input_dim), jnp.float32)
    mlp = MLP(input_dim, hidden_dim, output_dim, num_layers, k_p)

    out = jax.block_until_ready(mlp(x))
    assert out.shape == (batch, seq, output_dim)

    # Tight check vs a bf16-matched reference (same MXU dtype path).
    ref_bf16 = _reference(x, mlp.params, num_layers, use_bf16=True)
    ref_bf16 = ref_bf16.reshape(batch, seq, output_dim)
    assert jnp.allclose(out, ref_bf16, atol=1e-4, rtol=1e-4)

    # Loose check vs the full-f32 reference (bf16 weight/activation quant only).
    ref_f32 = _reference(x, mlp.params, num_layers, use_bf16=False)
    ref_f32 = ref_f32.reshape(batch, seq, output_dim)
    assert jnp.allclose(out, ref_f32, atol=5e-2, rtol=5e-2)

    # Exercise the multi-tile path with a non-divisible grid:
    # 600 rows -> grid of 2 x 512-row tiles, last block partial (masked store).
    big_rows = 600
    xb = jax.random.normal(k_x2, (big_rows, input_dim), jnp.float32)
    out_b = jax.block_until_ready(mlp(xb))
    ref_b = _reference(xb, mlp.params, num_layers, use_bf16=True)
    assert out_b.shape == (big_rows, output_dim)
    assert jnp.allclose(out_b, ref_b, atol=1e-4, rtol=1e-4)

    print("KERNEL_OK")
</pallas_src>

<mosaic_0001>
module attributes {stable_mosaic.version = 11 : i64} {
  func.func @_fused_mlp_kernel(%arg0: i32, %arg1: memref<16x16xf32, #tpu.memory_space<vmem>>, %arg2: memref<16x32xbf16, #tpu.memory_space<vmem>>, %arg3: memref<1x32xf32, #tpu.memory_space<vmem>>, %arg4: memref<32x32xbf16, #tpu.memory_space<vmem>>, %arg5: memref<1x32xf32, #tpu.memory_space<vmem>>, %arg6: memref<32x4xbf16, #tpu.memory_space<vmem>>, %arg7: memref<1x4xf32, #tpu.memory_space<vmem>>, %arg8: memref<16x4xf32, #tpu.memory_space<vmem>>) attributes {dimension_semantics = [#tpu.dimension_semantics<parallel>], iteration_bounds = array<i64: 1>, scalar_prefetch = 0 : i64, scratch_operands = 0 : i64, tpu.core_type = #tpu.core_type<tc>, window_params = [{transform_indices = @transform_0, window_bounds = array<i64: 16, 16>}, {pipeline_mode = #tpu.pipeline_mode<synchronous>, transform_indices = @transform_1, window_bounds = array<i64: 16, 32>}, {pipeline_mode = #tpu.pipeline_mode<synchronous>, transform_indices = @transform_2, window_bounds = array<i64: 1, 32>}, {pipeline_mode = #tpu.pipeline_mode<synchronous>, transform_indices = @transform_3, window_bounds = array<i64: 32, 32>}, {pipeline_mode = #tpu.pipeline_mode<synchronous>, transform_indices = @transform_4, window_bounds = array<i64: 1, 32>}, {pipeline_mode = #tpu.pipeline_mode<synchronous>, transform_indices = @transform_5, window_bounds = array<i64: 32, 4>}, {pipeline_mode = #tpu.pipeline_mode<synchronous>, transform_indices = @transform_6, window_bounds = array<i64: 1, 4>}, {transform_indices = @transform_7, window_bounds = array<i64: 16, 4>}]} {
    %c0 = arith.constant 0 : index
    %c0_0 = arith.constant 0 : index
    %0 = vector.load %arg1[%c0, %c0_0] : memref<16x16xf32, #tpu.memory_space<vmem>>, vector<16x16xf32>
    %1 = arith.truncf %0 : vector<16x16xf32> to vector<16x16xbf16>
    %c0_1 = arith.constant 0 : index
    %c0_2 = arith.constant 0 : index
    %2 = vector.load %arg2[%c0_1, %c0_2] : memref<16x32xbf16, #tpu.memory_space<vmem>>, vector<16x32xbf16>
    %cst = arith.constant dense<0.000000e+00> : vector<16x32xf32>
    %3 = tpu.matmul %1, %2, %cst {dimension_numbers = #tpu.dot_dimension_numbers<[1], [0], [0], [1], [0, 0, 1, 1], [], []>} : vector<16x16xbf16>, vector<16x32xbf16>, vector<16x32xf32> -> vector<16x32xf32>
    %c0_3 = arith.constant 0 : index
    %c0_4 = arith.constant 0 : index
    %4 = vector.load %arg3[%c0_3, %c0_4] : memref<1x32xf32, #tpu.memory_space<vmem>>, vector<1x32xf32>
    %5 = vector.broadcast %4 : vector<1x32xf32> to vector<16x32xf32>
    %6 = arith.addf %3, %5 : vector<16x32xf32>
    %cst_5 = arith.constant 0.000000e+00 : f32
    %7 = vector.broadcast %cst_5 : f32 to vector<16x32xf32>
    %8 = arith.maximumf %6, %7 : vector<16x32xf32>
    %9 = arith.truncf %8 : vector<16x32xf32> to vector<16x32xbf16>
    %c0_6 = arith.constant 0 : index
    %c0_7 = arith.constant 0 : index
    %10 = vector.load %arg4[%c0_6, %c0_7] : memref<32x32xbf16, #tpu.memory_space<vmem>>, vector<32x32xbf16>
    %cst_8 = arith.constant dense<0.000000e+00> : vector<16x32xf32>
    %11 = tpu.matmul %9, %10, %cst_8 {dimension_numbers = #tpu.dot_dimension_numbers<[1], [0], [0], [1], [0, 0, 1, 1], [], []>} : vector<16x32xbf16>, vector<32x32xbf16>, vector<16x32xf32> -> vector<16x32xf32>
    %c0_9 = arith.constant 0 : index
    %c0_10 = arith.constant 0 : index
    %12 = vector.load %arg5[%c0_9, %c0_10] : memref<1x32xf32, #tpu.memory_space<vmem>>, vector<1x32xf32>
    %13 = vector.broadcast %12 : vector<1x32xf32> to vector<16x32xf32>
    %14 = arith.addf %11, %13 : vector<16x32xf32>
    %cst_11 = arith.constant 0.000000e+00 : f32
    %15 = vector.broadcast %cst_11 : f32 to vector<16x32xf32>
    %16 = arith.maximumf %14, %15 : vector<16x32xf32>
    %17 = arith.truncf %16 : vector<16x32xf32> to vector<16x32xbf16>
    %c0_12 = arith.constant 0 : index
    %c0_13 = arith.constant 0 : index
    %18 = vector.load %arg6[%c0_12, %c0_13] : memref<32x4xbf16, #tpu.memory_space<vmem>>, vector<32x4xbf16>
    %cst_14 = arith.constant dense<0.000000e+00> : vector<16x4xf32>
    %19 = tpu.matmul %17, %18, %cst_14 {dimension_numbers = #tpu.dot_dimension_numbers<[1], [0], [0], [1], [0, 0, 1, 1], [], []>} : vector<16x32xbf16>, vector<32x4xbf16>, vector<16x4xf32> -> vector<16x4xf32>
    %c0_15 = arith.constant 0 : index
    %c0_16 = arith.constant 0 : index
    %20 = vector.load %arg7[%c0_15, %c0_16] : memref<1x4xf32, #tpu.memory_space<vmem>>, vector<1x4xf32>
    %21 = vector.broadcast %20 : vector<1x4xf32> to vector<16x4xf32>
    %22 = arith.addf %19, %21 : vector<16x4xf32>
    %c0_17 = arith.constant 0 : index
    %c0_18 = arith.constant 0 : index
    %23 = vector.load %arg8[%c0_17, %c0_18] : memref<16x4xf32, #tpu.memory_space<vmem>>, vector<16x4xf32>
    tpu.vector_store %arg8[%c0_17, %c0_18], %22 {strides = array<i32>} : memref<16x4xf32, #tpu.memory_space<vmem>>, vector<16x4xf32>,
    return
  }
  func.func @transform_0(%arg0: i32) -> (i32, i32) {
    %c0_i32 = arith.constant 0 : i32
    %c0_i32_0 = arith.constant 0 : i32
    return %arg0, %c0_i32 : i32, i32
  }
  func.func @transform_1(%arg0: i32) -> (i32, i32) {
    %c0_i32 = arith.constant 0 : i32
    %c0_i32_0 = arith.constant 0 : i32
    %c0_i32_1 = arith.constant 0 : i32
    return %c0_i32, %c0_i32_0 : i32, i32
  }
  func.func @transform_2(%arg0: i32) -> (i32, i32) {
    %c0_i32 = arith.constant 0 : i32
    %c0_i32_0 = arith.constant 0 : i32
    %c0_i32_1 = arith.constant 0 : i32
    return %c0_i32, %c0_i32_0 : i32, i32
  }
  func.func @transform_3(%arg0: i32) -> (i32, i32) {
    %c0_i32 = arith.constant 0 : i32
    %c0_i32_0 = arith.constant 0 : i32
    %c0_i32_1 = arith.constant 0 : i32
    return %c0_i32, %c0_i32_0 : i32, i32
  }
  func.func @transform_4(%arg0: i32) -> (i32, i32) {
    %c0_i32 = arith.constant 0 : i32
    %c0_i32_0 = arith.constant 0 : i32
    %c0_i32_1 = arith.constant 0 : i32
    return %c0_i32, %c0_i32_0 : i32, i32
  }
  func.func @transform_5(%arg0: i32) -> (i32, i32) {
    %c0_i32 = arith.constant 0 : i32
    %c0_i32_0 = arith.constant 0 : i32
    %c0_i32_1 = arith.constant 0 : i32
    return %c0_i32, %c0_i32_0 : i32, i32
  }
  func.func @transform_6(%arg0: i32) -> (i32, i32) {
    %c0_i32 = arith.constant 0 : i32
    %c0_i32_0 = arith.constant 0 : i32
    %c0_i32_1 = arith.constant 0 : i32
    return %c0_i32, %c0_i32_0 : i32, i32
  }
  func.func @transform_7(%arg0: i32) -> (i32, i32) {
    %c0_i32 = arith.constant 0 : i32
    %c0_i32_0 = arith.constant 0 : i32
    return %arg0, %c0_i32 : i32, i32
  }
}

</mosaic_0001>

<bundles_post_ra>
// kernel: tpu_custom_call.1
= control target key start
LH: loop header
LB: loop body
LE: loop exit
PB: predicated region body
PF: predicated region fallthrough
CT: control target
= control target key end

     0   :  { %12 = vsyncpa [#allocation3], 0  ;;  %s445_s0 = inlined_call_operand.vmem [shape: f32[16,16], index: 0, kind: input, shape index: {}]   ;;  %s446_s1 = inlined_call_operand.hbm [shape: bf16[16,32], index: 1, kind: input, shape index: {}]   ;;  %s447_s2 = inlined_call_operand.vmem [shape: f32[1,32], index: 2, kind: input, shape index: {}]   ;;  %s448_s3 = inlined_call_operand.hbm [shape: bf16[32,32], index: 3, kind: input, shape index: {}]   ;;  %s449_s4 = inlined_call_operand.vmem [shape: f32[1,32], index: 4, kind: input, shape index: {}]   ;;  %s450_s5 = inlined_call_operand.vmem [shape: bf16[32,4], index: 5, kind: input, shape index: {}]   ;;  %s451_s6 = inlined_call_operand.vmem [shape: f32[1,4], index: 6, kind: input, shape index: {}]   ;;  %s452_s7 = inlined_call_operand.vmem [shape: f32[16,4], index: 7, kind: output, shape index: {}]  }
   0x1   :  { %13 = vsyncpa [#allocation5], 0  ;;  %s364_s24 = smov [#allocation2]  }
   0x2   :  { %s21_s25 = sshll.u32 %s364_s24, 4  ;;  %s22_s25 = int_to_ptr.vmem [resolvable:$true] %s21_s25 }
   0x3   :  { %s328_s26 = scalar_lea.vmem %s22_s25, 128  ;;  %p333_p1 = scmp.lt.s32.totalorder %s22_s25, %s22_s25 }
   0x4   :  { %p329_p0 = scmp.ne.s32.totalorder %s22_s25, %s328_s26  ;;  %p334_p2 = scmp.lt.s32.totalorder %s328_s26, %s328_s26 }
   0x6   :  { %p335_p3 = por %p334_p2, %p333_p1 }
   0x8   :  { %p336_p4 = pnand %p335_p3, %p329_p0 }
   0xa   :  { %339 = shalt.err (!%p336_p4)
}
   0xb   :  { %s365_s27 = smov 64   ;;  %s366_s28 = smov 4  }
   0xc   :  { %27 = dma.hbm_to_vmem [thread:$0]  %s446_s1, 128, %s22_s25, [#allocation3], %s365_s27, %s365_s27, %s366_s28  }
   0xd   :  { %s367_s8 = smov [#allocation4]  }
   0xe   :  { %s35_s9 = sshll.u32 %s367_s8, 4  ;;  %s36_s9 = int_to_ptr.vmem [resolvable:$true] %s35_s9 }
   0xf   :  { %s348_s10 = scalar_lea.vmem %s36_s9, 256  ;;  %p353_p6 = scmp.lt.s32.totalorder %s36_s9, %s36_s9 }
  0x10   :  { %p349_p5 = scmp.ne.s32.totalorder %s36_s9, %s348_s10  ;;  %p354_p7 = scmp.lt.s32.totalorder %s348_s10, %s348_s10 }
  0x12   :  { %p355_p8 = por %p354_p7, %p353_p6 }
  0x14   :  { %p356_p9 = pnand %p355_p8, %p349_p5 }
  0x16   :  { %359 = shalt.err (!%p356_p9)
}
  0x17   :  { %41 = dma.hbm_to_vmem [thread:$0]  %s448_s3, 256, %s36_s9, [#allocation5], %s365_s27, %s365_s27, %s366_s28  }
  0x18   :  { %360 = dma.done.wait [#allocation3], 128  }
  0x19   :  { %361 = vsyncadd [#allocation3], 4294967168 }
  0x1a   :  { %362 = dma.done.wait [#allocation5], 256  }
  0x1b   :  { %363 = vsyncadd [#allocation5], 4294967040  ;;  %v368_v0 = vmov 0.0   ;;  %vm369_vm0 = vmmov 0   ;;  %v315_v1 = vld [vmem:[#allocation2] sm:$0xff]   ;;  %v56_v3 = vld [vmem:[%s445_s0 + $0x8] sm:$0xff] }
  0x1c   :  { %287 = vmatprep.subr.bf16.mxu0 %v368_v0  ;;  %289 = vmatprep.mubr.msk.bf16.mxu0 %vm369_vm0, %v368_v0  ;;  %v55_v2 = vld [vmem:[%s445_s0] sm:$0xff]  ;;  %vm73_vm1 = vcmask 130048   ;;  %v316_v5 = vld [vmem:[#allocation4 + $0x8] sm:$0xff]   ;;  %v317_v6 = vld [vmem:[#allocation4] sm:$0xff]   ;;  %vm144_vm2 = vcmask 261120   ;;  %vm259_vm3 = vcmask 31744  }
  0x1d   :  { %293 = vmatprep.subr.bf16.mxu1 %v368_v0  ;;  %297 = vmatprep.mubr.msk.bf16.mxu1 %vm369_vm0, %v368_v0  ;;  %v57_v4 = vpack.c.bf16 %v56_v3, %v55_v2  ;;  %v268_v7 = vld [vmem:[%s447_s2] ss:$0 sm:$0xff]  ;;  %v318_v17 = vld [vmem:[%s450_s5 + $0x8] sm:$0xff]  }
  0x1e   :  { %288 = vmatpush3.bf16.msra.mxu0 %v315_v1  ;;  %294 = vmatpush3.bf16.msra.mxu1 %v316_v5  ;;  %v319_v18 = vld [vmem:[%s450_s5] sm:$0xff]  }
  0x1f   :  { %301 = vmatprep.subr.bf16.mxu0 %v368_v0  ;;  %295 = vmatprep.subr.bf16.mxu1 %v368_v0  ;;  %v271_v19 = vld [vmem:[%s449_s4] ss:$0 sm:$0xff] }
  0x20   :  { %v275_v29 = vld [vmem:[%s451_s6] ss:$0 sm:$0xff] }
  0x21   :  { %290 = vmatmul.mubr.msk.bf16.vlgmr.msra.gmra.mxu0 %vm73_vm1, %v57_v4 }
  0x22   :  { %305 = vmatprep.mubr.msk.bf16.mxu0 %vm369_vm0, %v368_v0  ;;  %296 = vmatpush3.bf16.msra.mxu1 %v317_v6 }
  0x23   :  { %302 = vmatpush3.bf16.msra.mxu0 %v318_v17 }
  0x24   :  { %303 = vmatprep.subr.bf16.mxu0 %v368_v0 }
  0x27   :  { %304 = vmatpush3.bf16.msra.mxu0 %v319_v18 }
  0xe1   :  { %v111_v8 = vpop.f32.mrf.mxu0 }
  0xe2   :  { %v112_v10 = vadd.f32 %v268_v7, %v111_v8 }
  0xe3   :  { %v291_v9 = vpop.f32.mrf.mxu0 }
  0xe4   :  { %v118_v14 = vmax.f32 %v112_v10, 0.0 }
  0xe5   :  { %v114_v11 = vpop.f32.mrf.mxu0 }
  0xe6   :  { %v115_v12 = vadd.f32 %v268_v7, %v114_v11 }
  0xe7   :  { %v292_v13 = vpop.f32.mrf.mxu0 }
  0xe8   :  { %v119_v15 = vmax.f32 %v115_v12, 0.0 }
  0xea   :  { %v120_v16 = vpack.c.bf16 %v119_v15, %v118_v14 }
  0xec   :  { %298 = vmatmul.mubr.msk.bf16.vlgmr.msra.gmra.mxu1 %vm144_vm2, %v120_v16 }
 0x1ac   :  { %v182_v20 = vpop.f32.mrf.mxu1 }
 0x1ad   :  { %v183_v22 = vadd.f32 %v271_v19, %v182_v20 }
 0x1ae   :  { %v299_v21 = vpop.f32.mrf.mxu1 }
 0x1af   :  { %v189_v26 = vmax.f32 %v183_v22, 0.0 }
 0x1b0   :  { %v185_v23 = vpop.f32.mrf.mxu1 }
 0x1b1   :  { %v186_v24 = vadd.f32 %v271_v19, %v185_v23 }
 0x1b2   :  { %v300_v25 = vpop.f32.mrf.mxu1 }
 0x1b3   :  { %v190_v27 = vmax.f32 %v186_v24, 0.0 }
 0x1b5   :  { %v191_v28 = vpack.c.bf16 %v190_v27, %v189_v26 }
 0x1b7   :  { %306 = vmatmul.mubr.msk.bf16.vlgmr.msra.gmra.mxu0 %vm144_vm2, %v191_v28 }
 0x277   :  { %v252_v30 = vpop.f32.mrf.mxu0 }
 0x278   :  { %v253_v31 = vadd.f32 %v275_v29, %v252_v30 }
 0x279   :  { %v307_v32 = vpop.f32.mrf.mxu0 }
 0x27a   :  { %260 = vst.msk [vmem:[%s452_s7] sm:$0xff] %vm259_vm3, %v253_v31 }
 0x27b   :  { %v255_v33 = vpop.f32.mrf.mxu0 }
 0x27c   :  { %v256_v34 = vadd.f32 %v275_v29, %v255_v33 }
 0x27d   :  { %v308_v35 = vpop.f32.mrf.mxu0 }
 0x27e   :  { %261 = vst.msk [vmem:[%s452_s7 + $0x8] sm:$0xff] %vm259_vm3, %v256_v34 }
 0x27f   :  { %266 = vsyncpa [#allocation3], 1 }
 0x280   :  { %267 = vsyncpa [#allocation5], 1 }

</bundles_post_ra>
